<compile_context>
chip_gen: v7x
topology: tpu7x:2x2x1
jax: 0.10.0
libtpu: 0.0.40
codegen_flags: <defaults>
</compile_context>

<pallas_src>
import jax
import jax.numpy as jnp
from jax.experimental import pallas as pl
from jax.experimental.pallas import tpu as pltpu


def modulator_kernel(w_ref, b_ref, m_ref, x_ref, y_ref, o_ref):
    # w_ref, b_ref: scalar Linear(1,1) params in SMEM, shape (1,)
    # m_ref: (bm, 1) block; x_ref / y_ref / o_ref: (bm, bn) blocks in VMEM
    w = w_ref[0]
    b = b_ref[0]
    # Linear(1,1) + sigmoid on the tiny (bm, 1) sliver, in f32 (EUP op, ~free).
    alpha = jax.nn.sigmoid(m_ref[...].astype(jnp.float32) * w + b)

    x = x_ref[...].astype(jnp.float32)
    y = y_ref[...].astype(jnp.float32)
    # Lerp form: y + alpha*(x - y)  ==  alpha*x + (1-alpha)*y.
    # alpha stays in f32 (no quantization of the gate); single cast at the store.
    o_ref[...] = (y + alpha * (x - y)).astype(o_ref.dtype)


def _tpu_memory_profile():
    """Return (vmem_capacity_bytes, num_tensorcores) with safe fallbacks."""
    vmem_cap = 64 << 20  # conservative default (v7x-sized) if query fails
    try:
        info = pltpu.get_tpu_info()
        vmem_cap = int(info.vmem_capacity_bytes)
    except Exception:
        pass
    # Heuristic: 64 MiB-per-core parts (v7x) have 2 TCs/chip; 128 MiB parts have 1.
    num_cores = 2 if vmem_cap < (100 << 20) else 1
    return vmem_cap, num_cores


def _choose_tiles(B, D, itemsize, target_bytes, num_cores):
    """Pick (bm, bn): lane-dense, multiple of the packed (sublane, 128) tile,
    ~target_bytes per block.  Ragged edges are masked by Pallas."""
    # Packed sublane tile: 8 rows for 4-byte, 16 for 2-byte, 32 for 1-byte dtypes.
    sublane = max(8, 32 // max(int(itemsize), 1))

    # Lane tile: full D when D <= 128 (legal as the full-array dim), otherwise a
    # large multiple of 128 so stores are unmasked vst and DMAs are lane-dense.
    if D <= 128:
        bn = D
        # TODO(synk): for D < 128 the store path is masked; pad D to 128 at the
        # call site if this kernel ever runs with narrow feature dims.
    else:
        bn = min((D // 128) * 128, 8192)

    # Row tile: aim for ~target_bytes per block, rounded to the sublane tile.
    bm = max(sublane, target_bytes // (bn * itemsize))
    bm = (int(bm) // sublane) * sublane

    # On multi-TC chips (v7x), keep at least `num_cores` row-steps so each core
    # gets work; on single-TC chips a split only adds per-step overhead.
    if num_cores >= 2 and B >= 2 * sublane:
        per_core = -(-B // num_cores)  # ceil
        per_core = ((per_core + sublane - 1) // sublane) * sublane
        bm = min(bm, per_core)

    if bm >= B:
        bm = B  # a block equal to the full array dim is always legal
    return bm, bn


def modulator(x, y, m, w, b):
    B, D = x.shape
    assert m.shape == (B, 1)

    itemsize = jnp.dtype(x.dtype).itemsize
    vmem_cap, num_cores = _tpu_memory_profile()

    big_vmem = vmem_cap >= (100 << 20)  # v5e/v6e: 128 MiB; v7x: 64 MiB
    target_bytes = (6 << 20) if big_vmem else (4 << 20)

    bm, bn = _choose_tiles(B, D, itemsize, target_bytes, num_cores)
    grid = (pl.cdiv(B, bm), pl.cdiv(D, bn))

    # VMEM budget: 3 streamed arrays (x, y, out), double-buffered, plus slack.
    block_bytes = bm * bn * itemsize
    working = 2 * 3 * block_bytes + (2 << 20)
    if big_vmem:
        vmem_limit = min(max(working, 32 << 20), 96 << 20)
    else:
        # Stay under v7x's 32 MiB scoped default / 64 MiB physical VMEM.
        vmem_limit = min(max(working, 24 << 20), 28 << 20)

    w32 = w.astype(jnp.float32)
    b32 = b.astype(jnp.float32)

    return pl.pallas_call(
        modulator_kernel,
        out_shape=jax.ShapeDtypeStruct((B, D), x.dtype),
        grid=grid,
        in_specs=[
            pl.BlockSpec(memory_space=pltpu.MemorySpace.SMEM),   # w (1,)
            pl.BlockSpec(memory_space=pltpu.MemorySpace.SMEM),   # b (1,)
            pl.BlockSpec((bm, 1), lambda i, j: (i, 0)),          # m
            pl.BlockSpec((bm, bn), lambda i, j: (i, j)),         # x
            pl.BlockSpec((bm, bn), lambda i, j: (i, j)),         # y
        ],
        out_specs=pl.BlockSpec((bm, bn), lambda i, j: (i, j)),
        compiler_params=pltpu.CompilerParams(
            dimension_semantics=("parallel", "parallel"),
            vmem_limit_bytes=int(vmem_limit),
        ),
    )(w32, b32, m, x, y)


def modulator_ref(x, y, m, w, b):
    alpha = jax.nn.sigmoid(m * w[0] + b[0])
    return alpha * x + (1.0 - alpha) * y


if __name__ == "__main__":
    key = jax.random.PRNGKey(0)
    kx, ky, km, kw, kb = jax.random.split(key, 5)

    B, D = 16, 128
    x = jax.random.normal(kx, (B, D), dtype=jnp.float32)
    y = jax.random.normal(ky, (B, D), dtype=jnp.float32)
    m = jax.random.normal(km, (B, 1), dtype=jnp.float32)

    # Deterministic nn.Linear(1, 1) params (weight and bias are scalars).
    w = jax.random.normal(kw, (1,), dtype=jnp.float32)  # weight
    b = jax.random.normal(kb, (1,), dtype=jnp.float32)  # bias

    out = modulator(x, y, m, w, b)
    out = jax.block_until_ready(out)

    ref = modulator_ref(x, y, m, w, b)
    assert out.shape == (B, D)
    assert jnp.allclose(out, ref, atol=1e-5, rtol=1e-5), "mismatch vs reference"

    print("KERNEL_OK")
</pallas_src>

<mosaic_0001>
module attributes {stable_mosaic.version = 11 : i64} {
  func.func @modulator_kernel(%arg0: i32, %arg1: i32, %arg2: memref<1xf32, #tpu.memory_space<smem>>, %arg3: memref<1xf32, #tpu.memory_space<smem>>, %arg4: memref<8x1xf32, #tpu.memory_space<vmem>>, %arg5: memref<8x128xf32, #tpu.memory_space<vmem>>, %arg6: memref<8x128xf32, #tpu.memory_space<vmem>>, %arg7: memref<8x128xf32, #tpu.memory_space<vmem>>) attributes {dimension_semantics = [#tpu.dimension_semantics<parallel>, #tpu.dimension_semantics<parallel>], iteration_bounds = array<i64: 2, 1>, scalar_prefetch = 0 : i64, scratch_operands = 0 : i64, tpu.core_type = #tpu.core_type<tc>, window_params = [{transform_indices = @transform_0, window_bounds = array<i64: 1>}, {transform_indices = @transform_1, window_bounds = array<i64: 1>}, {transform_indices = @transform_2, window_bounds = array<i64: 8, 1>}, {transform_indices = @transform_3, window_bounds = array<i64: 8, 128>}, {transform_indices = @transform_4, window_bounds = array<i64: 8, 128>}, {transform_indices = @transform_5, window_bounds = array<i64: 8, 128>}]} {
    %c0 = arith.constant 0 : index
    %0 = memref.load %arg2[%c0] : memref<1xf32, #tpu.memory_space<smem>>
    %c0_0 = arith.constant 0 : index
    %1 = memref.load %arg3[%c0_0] : memref<1xf32, #tpu.memory_space<smem>>
    %c0_1 = arith.constant 0 : index
    %c0_2 = arith.constant 0 : index
    %2 = vector.load %arg4[%c0_1, %c0_2] : memref<8x1xf32, #tpu.memory_space<vmem>>, vector<8x1xf32>
    %3 = vector.broadcast %0 : f32 to vector<8x1xf32>
    %4 = arith.mulf %2, %3 : vector<8x1xf32>
    %5 = vector.broadcast %1 : f32 to vector<8x1xf32>
    %6 = arith.addf %4, %5 : vector<8x1xf32>
    %7 = arith.negf %6 : vector<8x1xf32>
    %8 = math.exp %7 : vector<8x1xf32>
    %cst = arith.constant 1.000000e+00 : f32
    %9 = vector.broadcast %cst : f32 to vector<8x1xf32>
    %10 = arith.addf %9, %8 : vector<8x1xf32>
    %11 = arith.divf %9, %10 : vector<8x1xf32>
    %c0_3 = arith.constant 0 : index
    %c0_4 = arith.constant 0 : index
    %12 = vector.load %arg5[%c0_3, %c0_4] : memref<8x128xf32, #tpu.memory_space<vmem>>, vector<8x128xf32>
    %c0_5 = arith.constant 0 : index
    %c0_6 = arith.constant 0 : index
    %13 = vector.load %arg6[%c0_5, %c0_6] : memref<8x128xf32, #tpu.memory_space<vmem>>, vector<8x128xf32>
    %14 = arith.subf %12, %13 : vector<8x128xf32>
    %15 = vector.broadcast %11 : vector<8x1xf32> to vector<8x128xf32>
    %16 = arith.mulf %15, %14 : vector<8x128xf32>
    %17 = arith.addf %13, %16 : vector<8x128xf32>
    %c0_7 = arith.constant 0 : index
    %c0_8 = arith.constant 0 : index
    %18 = vector.load %arg7[%c0_7, %c0_8] : memref<8x128xf32, #tpu.memory_space<vmem>>, vector<8x128xf32>
    tpu.vector_store %arg7[%c0_7, %c0_8], %17 {strides = array<i32>} : memref<8x128xf32, #tpu.memory_space<vmem>>, vector<8x128xf32>,
    return
  }
  func.func @transform_0(%arg0: i32, %arg1: i32) -> i32 {
    %c0_i32 = arith.constant 0 : i32
    %c0_i32_0 = arith.constant 0 : i32
    return %c0_i32 : i32
  }
  func.func @transform_1(%arg0: i32, %arg1: i32) -> i32 {
    %c0_i32 = arith.constant 0 : i32
    %c0_i32_0 = arith.constant 0 : i32
    return %c0_i32 : i32
  }
  func.func @transform_2(%arg0: i32, %arg1: i32) -> (i32, i32) {
    %c0_i32 = arith.constant 0 : i32
    %c0_i32_0 = arith.constant 0 : i32
    return %arg0, %c0_i32 : i32, i32
  }
  func.func @transform_3(%arg0: i32, %arg1: i32) -> (i32, i32) {
    %c0_i32 = arith.constant 0 : i32
    return %arg0, %arg1 : i32, i32
  }
  func.func @transform_4(%arg0: i32, %arg1: i32) -> (i32, i32) {
    %c0_i32 = arith.constant 0 : i32
    return %arg0, %arg1 : i32, i32
  }
  func.func @transform_5(%arg0: i32, %arg1: i32) -> (i32, i32) {
    %c0_i32 = arith.constant 0 : i32
    return %arg0, %arg1 : i32, i32
  }
}

</mosaic_0001>

<bundles_post_ra>
// kernel: tpu_custom_call.1
= control target key start
LH: loop header
LB: loop body
LE: loop exit
PB: predicated region body
PF: predicated region fallthrough
CT: control target
= control target key end

     0   :  { %s740_s0 = inlined_call_operand.<no memory space> [shape: f32[1], index: 0, kind: input, shape index: {}]   ;;  %s741_s1 = inlined_call_operand.<no memory space> [shape: f32[1], index: 1, kind: input, shape index: {}]   ;;  %s742_s2 = inlined_call_operand.vmem [shape: f32[16,1], index: 2, kind: input, shape index: {}]   ;;  %s743_s3 = inlined_call_operand.vmem [shape: f32[16,128], index: 3, kind: input, shape index: {}]   ;;  %s744_s4 = inlined_call_operand.vmem [shape: f32[16,128], index: 4, kind: input, shape index: {}]   ;;  %s745_s5 = inlined_call_operand.hbm [shape: f32[16,128], index: 5, kind: output, shape index: {}]  }
   0x1   :  { %10 = sst [smem:[#allocation2]] %s740_s0 }
   0x2   :  { %11 = sst [smem:[#allocation3]] %s741_s1 }
   0x3   :  { %12 = vsyncpa [#allocation5], 0 }
   0x4   :  { %14 = vsyncpa [#allocation5 + $0x1], 0  ;;  %s622_s22 = smov 0   ;;  %s624_s23 = smov 0  }
   0x5   :  { %s626_s24 = smov 0   ;;  %s628_s25 = smov 0  }
   0x6   :  { %s630_s26 = smov 0   ;;  %s632_s27 = smov 0  }
   0x7 LB: > { %s429_s0 = sadd.s32 4294967295, %s582_s27   ;;  %s430_s1 = sadd.s32 4294967294, %s582_s27   ;;  %s582_s27 = sphi %s632_s27, %s20_s27   ;;  %s578_s26 = sphi %s630_s26, %s752_s26   ;;  %s574_s25 = sphi %s628_s25, %s751_s25   ;;  %s570_s24 = sphi %s626_s24, %s750_s24   ;;  %s566_s23 = sphi %s624_s23, %s749_s23   ;;  %s562_s22 = sphi %s622_s22, %s748_s22  }
   0x8   : > { %s32_s28 = sadd.s32 1, %s578_s26  ;;  %s165_s29 = sadd.s32 1, %s570_s24 }
   0x9   : > { %p34_p0 = scmp.ge.s32.totalorder %s32_s28, 2  ;;  %p175_p1 = scmp.ne.s32.totalorder %s570_s24, %s566_s23 }
   0xa   : > { %p176_p2 = scmp.eq.s32.totalorder %s429_s0, 1  ;;  %p181_p3 = scmp.ne.s32.totalorder %s566_s23, %s562_s22 }
   0xb   : > { %s754_s28 = smov (%p34_p0, %s32_s28), 0  ;;  %p182_p5 = scmp.eq.s32.totalorder %s430_s1, 1 }
   0xc   : > { %p662_p4 = por %p176_p2, %p175_p1  ;;  %s160_s6 = ssub.s32 %s578_s26, %s754_s28 }
   0xd   : > { %p433_p6 = scmp.ge.s32.totalorder %s582_s27, 1  ;;  %p163_p7 = scmp.eq.s32.totalorder %s160_s6, 0 }
   0xe   : > { %p669_p8 = por %p182_p5, %p181_p3  ;;  %p233_p9 = scmp.lt.s32.totalorder %s582_s27, 3 }
   0xf   : > { %s675_s8 = scalar_select %p163_p7, %s570_s24, %s165_s29  }
  0x10   : > { %p234_p10 = pnand %p433_p6, %p233_p9 }
  0x11   : > { %p274_p11 = scmp.lt.s32.totalorder (!%p234_p10), %s574_s25, 1  ;;  %s292_s9 = sld [smem:[#allocation2]] (!%p234_p10)  ;;  %v584_v0 = vmov (!%p234_p10), 0  }
  0x12   : > { %237 = sbr.rel (%p234_p10) target bundleno = 206 (0xce), region = 40  ;;  %499 = vset.pattern.permute.xlu0 (!%p234_p10), %v584_v0  ;;  %s293_s10 = sld [smem:[#allocation3]] (!%p234_p10) }
  0x13   : > { %s271_s0 = sand.u32 (!%p234_p10), 1, %s566_s23   ;;  %s440_s29 = sshll.u32 (!%p234_p10), %s574_s25, 7 }
  0x14   : > { %s434_s1 = sshll.u32 (!%p234_p10), %s271_s0, 3  ;;  %s693_s13 = scalar_lea.hbm (!%p234_p10), %s745_s5, %s440_s29 }
  0x15   : > { %s273_s6 = scalar_lea.vmem (!%p234_p10), [#allocation4], %s434_s1 }
  0x17   : > { %v295_v2 = vstv (!%p234_p10), %s292_s9  ;;  %s331_s9 = sshll.u32 (!%p234_p10), %s273_s6, 4  ;;  %s695_s9 = int_to_ptr.vmem [resolvable:$true] %s331_s9 }
  0x18   : > { %v297_v4 = vstv (!%p234_p10), %s293_s10  ;;  %s504_s14 = scalar_lea.vmem (!%p234_p10), %s695_s9, 128 }
  0x19   : > { %s275_s11 = scalar_select %p274_p11, %s574_s25, 1 }
  0x1a   : > { %p505_p12 = scmp.ne.s32.totalorder %s695_s9, %s504_s14  ;;  %s585_s25 = smov [#allocation4]  }
  0x1b   : > { %s435_s12 = sshll.u32 %s275_s11, 3 }
  0x1c   : > { %s277_s15 = scalar_lea.vmem %s742_s2, %s435_s12  ;;  %s284_s18 = scalar_lea.vmem %s743_s3, %s435_s12 }
  0x1d   : > { %v294_v1 = vld [vmem:[%s277_s15] sm:$0xff]  ;;  %s291_s21 = scalar_lea.vmem %s744_s4, %s435_s12  ;;  %s317_s12 = scalar_lea.sflag [#allocation5], %s271_s0 }
  0x1e   : > { %v296_v3 = vmul.f32 %v295_v2, %v294_v1  ;;  %v305_v10 = vld [vmem:[%s284_s18] sm:$0xff]  ;;  %p506_p13 = pnand %p505_p12, %p662_p4  ;;  %s508_s15 = sshll.u32 %s585_s25, 4  ;;  %s509_s15 = int_to_ptr.vmem [resolvable:$false] %s508_s15 }
  0x1f   : > { %v306_v11 = vld [vmem:[%s291_s21] sm:$0xff]  ;;  %s510_s16 = scalar_lea.vmem %s509_s15, 256  ;;  %p511_p1 = scmp.lt.s32.totalorder %s695_s9, %s509_s15 }
  0x20   : > { %v298_v5 = vadd.f32 %v297_v4, %v296_v3  ;;  %v307_v12 = vsub.f32 %v305_v10, %v306_v11  ;;  %p507_p0 = pneg %p506_p13  ;;  %p512_p2 = scmp.lt.s32.totalorder %s510_s16, %s504_s14 }
  0x22   : > { %v438_v6 = vmul.f32 -1.442695, %v298_v5  ;;  %p513_p3 = por %p512_p2, %p511_p1 }
  0x24   : > { %500 = vpow2.f32 %v438_v6  ;;  %p514_p5 = pnand %p513_p3, %p507_p0 }
  0x2e   : > { %v501_v7 = vpop.eup %500 }
  0x2f   : > { %v302_v8 = vadd.f32 1.0, %v501_v7 }
  0x31   : > { %502 = vrcp.f32 %v302_v8 }
  0x3b   : > { %v503_v9 = vpop.eup %502 }
  0x3c   : > { %310 = vperm.xlu0 %499, %v503_v9  }
  0xbb   : > { %v311_v13 = vpop.permute.xlu0 %310 }
  0xbc   : > { %v313_v14 = vmul.f32 %v311_v13, %v307_v12 }
  0xbe   : > { %v314_v15 = vadd.f32 %v313_v14, %v306_v11 }
  0xc0   : > { %315 = vst [vmem:[%s273_s6] sm:$0xff] %v314_v15 }
  0xc1   : > { %517 = shalt.err (!%p514_p5)
}
  0xc2   : > { %s518_s17 = scalar_lea.hbm %s693_s13, 128  ;;  %s522_s20 = scalar_lea.hbm %s745_s5, 256 }
  0xc3   : > { %p519_p6 = scmp.ne.s32.totalorder %s693_s13, %s518_s17  ;;  %p523_p10 = scmp.lt.u32.totalorder %s693_s13, %s745_s5 }
  0xc4   : > { %p524_p11 = scmp.lt.u32.totalorder %s522_s20, %s518_s17  ;;  %p526_p13 = scmp.lt.u32.totalorder %s518_s17, %s693_s13 }
  0xc5   : > { %p520_p7 = pnand %p519_p6, %p662_p4 }
  0xc6   : > { %p525_p12 = por %p524_p11, %p523_p10 }
  0xc7   : > { %p521_p9 = pneg %p520_p7 }
  0xc8   : > { %p527_p0 = por %p526_p13, %p525_p12 }
  0xca   : > { %p528_p1 = pnand %p527_p0, %p521_p9 }
  0xcc   : > { %531 = shalt.err (!%p528_p1)
}
  0xcd   : > { %443 = dma.vmem_to_hbm [thread:$0]  (%p662_p4), %s695_s9, 128, %s693_s13, %s317_s12  }
  0xce PF: > { %p449_p2 = scmp.ge.s32.totalorder %s582_s27, 2  ;;  %s343_s1 = sand.u32 1, %s562_s22  }
  0xcf   : > { %s344_s29 = scalar_lea.sflag [#allocation5], %s343_s1 }
  0xd0   : > { %p446_p3 = pnand %p449_p2, %p669_p8 }
  0xd2   : > { %557 = dma.done.wait (!%p446_p3), %s344_s29, 128  }
  0xd3   : > { %559 = vsyncadd (!%p446_p3), %s344_s29, 4294967168  ;;  %s20_s27 = sadd.s32 1, %s582_s27   ;;  %s748_s22 = smov %s566_s23 }
  0xd4   : > { %p17_p5 = scmp.ge.s32.totalorder %s20_s27, 4   ;;  %s749_s23 = smov %s570_s24 }
  0xd5   : > { %s750_s24 = smov %s675_s8  ;;  %s751_s25 = smov %s578_s26 }
  0xd6   : > { %s752_s26 = smov %s754_s28  ;;  %19 = sbr.rel (!%p17_p5) target bundleno = 7 (0x7), region = 81 }
  0xdd   :  { %349 = vsyncpa [#allocation5], 1 }
  0xde   :  { %351 = vsyncpa [#allocation5 + $0x1], 1 }

</bundles_post_ra>
